<compile_context>
chip_gen: v6e
topology: v6e:2x2x1
jax: 0.10.0
libtpu: 0.0.40
codegen_flags: <defaults>
</compile_context>

<pallas_src>
from functools import partial
import math

import jax
import jax.numpy as jnp
from jax import lax
from jax.experimental import pallas as pl
from jax.experimental.pallas import tpu as pltpu


# ----------------------------------------------------------------------------- helpers


def _round_up(x: int, m: int) -> int:
    return ((x + m - 1) // m) * m


def _vmem_budget_and_limit(budget_override=None, limit_override=None):
    """Generation-aware VMEM block budget + scoped-VMEM limit (bytes)."""
    try:
        cap = int(pltpu.get_tpu_info().vmem_capacity_bytes)
    except Exception:
        cap = 64 * 1024 * 1024  # conservative fallback (CPU interpret / unknown chip)
    if cap <= 64 * 1024 * 1024:           # v7x-class: 64 MiB physical per TC
        budget, limit = 24 << 20, 48 << 20
    else:                                  # v5e / v6e: 128 MiB physical
        budget, limit = 48 << 20, 96 << 20
    if budget_override:
        budget = int(budget_override)
    if limit_override:
        limit = int(limit_override)
    return budget, limit


def _select_tiles_tiled_n(K, N, itemsize, budget, tm=768, tn=1024, tk=512):
    """Tile sizes for the N-tiled (no-LayerNorm) path."""
    TM = int(tm)
    TN = min(_round_up(N, 128), int(tn))
    TK = min(_round_up(K, 128), int(tk))

    def est(tm_, tn_, tk_):
        return (2 * tm_ * tk_ * itemsize      # x blocks (double-buffered)
                + 2 * tk_ * tn_ * itemsize    # W blocks
                + 2 * tm_ * tn_ * 4           # f32 output blocks (also the accumulator)
                + 4 * tn_ * 4)                # bias blocks

    # Arithmetic intensity ~ TM flops/byte (W tile dominates HBM traffic), so keep TM
    # high and shrink TN, then TK, first.
    while est(TM, TN, TK) > budget and TN > 256:
        TN = max(256, _round_up(TN // 2, 128))
    while est(TM, TN, TK) > budget and TK > 256:
        TK = max(256, _round_up(TK // 2, 128))
    # Generation-aware TM floor (~HBM roofline crossover 240/640/310 flops/byte on
    # v5e/v6e/v7x): only drop below 256 as a last resort.
    while est(TM, TN, TK) > budget and TM > 256:
        TM = max(256, _round_up(TM // 2, 8))
    while est(TM, TN, TK) > budget and TM > 8:
        TM = max(8, _round_up(TM // 2, 8))
    return TM, TN, TK


def _select_tiles_full_n(K, n_pad, itemsize, budget, tm=768, tk=512):
    """Tile sizes for the full-N (LayerNorm) path."""
    TM = int(tm)
    TK = min(_round_up(K, 128), int(tk))

    def est(tm_, tk_):
        return (2 * tm_ * tk_ * itemsize
                + 2 * tk_ * n_pad * itemsize
                + 2 * tm_ * n_pad * 4
                + 6 * n_pad * 4)

    while est(TM, TK) > budget and TK > 128:
        TK = max(128, _round_up(TK // 2, 128))
    while est(TM, TK) > budget and TM > 256:
        TM = max(256, _round_up(TM // 2, 8))
    while est(TM, TK) > budget and TM > 8:
        TM = max(8, _round_up(TM // 2, 8))
    return TM, TK


def _pad2(a, rows, cols):
    r, c = a.shape
    if r == rows and c == cols:
        return a
    return jnp.pad(a, ((0, rows - r), (0, cols - c)))


def _pad_row(v, n, n_pad):
    v = jnp.reshape(jnp.asarray(v, jnp.float32), (1, n))
    if n == n_pad:
        return v
    return jnp.pad(v, ((0, 0), (0, n_pad - n)))


def _apply_dropout(y, seed_u32, row_off, col_off, p):
    """nn.Dropout(p) training semantics: keep w.p. (1-p), scale kept by 1/(1-p).

    Stateless hash of (seed, global row, global col); row and col are mixed through the
    hash separately so there is no 32-bit linear-index wraparound at large M*N.
    """
    row = lax.broadcasted_iota(jnp.int32, y.shape, 0) + row_off
    col = lax.broadcasted_iota(jnp.int32, y.shape, 1) + col_off
    r = lax.convert_element_type(row, jnp.uint32)
    c = lax.convert_element_type(col, jnp.uint32)
    h = (r ^ (seed_u32 * jnp.uint32(0x9E3779B9))) * jnp.uint32(0xCC9E2D51)
    h = h ^ (h >> 16)
    h = (h ^ (c * jnp.uint32(0x85EBCA77))) * jnp.uint32(0x27D4EB2F)
    h = (h ^ (h >> 15)) * jnp.uint32(0x165667B1)
    h = h ^ (h >> 16)
    thr = min(int(round(p * 4294967296.0)), 4294967295)   # clamp: p->1 cannot wrap
    keep = h >= jnp.uint32(thr)
    return jnp.where(keep, y * (1.0 / (1.0 - p)), 0.0)


# ----------------------------------------------------------------------------- kernels


def _linear_act_drop_kernel(seed_ref, x_ref, w_ref, b_ref, o_ref, *,
                            activation: str, dropout_p: float, tm: int, tn: int):
    """Tiled-N path: Linear -> activation -> dropout.  grid = (M, N, K), K last."""
    # program_id / num_programs MUST be read at the top level (not inside pl.when):
    # nested reads have no CPU lowering rule and break TPU interpret mode.
    i = pl.program_id(0)
    j = pl.program_id(1)
    k = pl.program_id(2)
    nk = pl.num_programs(2)
    row_off = i * tm
    col_off = j * tn

    @pl.when(k == 0)
    def _init():
        o_ref[...] = jnp.zeros_like(o_ref)

    # MXU: (TM,TK)@(TK,TN), f32 accumulation directly into the VMEM-resident output
    # block (its block index is constant along k) -> no accumulator scratch needed.
    o_ref[...] += jnp.dot(x_ref[...], w_ref[...], preferred_element_type=jnp.float32)

    @pl.when(k == nk - 1)
    def _finalize():
        y = o_ref[...] + b_ref[...]
        if activation == "relu":
            y = jnp.maximum(y, 0.0)
        elif activation == "sigmoid":
            y = jax.nn.sigmoid(y)
        if dropout_p >= 1.0:
            y = jnp.zeros_like(y)
        elif dropout_p > 0.0:
            seed = lax.convert_element_type(seed_ref[0], jnp.uint32)
            y = _apply_dropout(y, seed, row_off, col_off, dropout_p)
        o_ref[...] = y


def _linear_act_ln_drop_kernel(seed_ref, x_ref, w_ref, b_ref, gamma_ref, beta_ref,
                               o_ref, *, activation: str, dropout_p: float,
                               ln_eps: float, true_n: int, n_pad: int, tm: int):
    """Full-N path (LayerNorm needs the whole row): grid = (M, K), K last."""
    i = pl.program_id(0)
    k = pl.program_id(1)
    nk = pl.num_programs(1)
    row_off = i * tm

    @pl.when(k == 0)
    def _init():
        o_ref[...] = jnp.zeros_like(o_ref)

    o_ref[...] += jnp.dot(x_ref[...], w_ref[...], preferred_element_type=jnp.float32)

    @pl.when(k == nk - 1)
    def _finalize():
        y = o_ref[...] + b_ref[...]
        if activation == "relu":
            y = jnp.maximum(y, 0.0)
        elif activation == "sigmoid":
            y = jax.nn.sigmoid(y)

        # One-pass LayerNorm over the TRUE feature width; mask padded columns so a
        # non-zero-preserving activation (e.g. sigmoid) cannot pollute the statistics.
        if n_pad != true_n:
            col = lax.broadcasted_iota(jnp.int32, y.shape, 1)
            y_stats = jnp.where(col < true_n, y, 0.0)
        else:
            y_stats = y
        inv_n = 1.0 / float(true_n)
        s = jnp.sum(y_stats, axis=-1, keepdims=True)
        ss = jnp.sum(y_stats * y_stats, axis=-1, keepdims=True)
        mean = s * inv_n
        var = jnp.maximum(ss * inv_n - mean * mean, 0.0)
        inv = lax.rsqrt(var + ln_eps)
        y = (y - mean) * inv * gamma_ref[...] + beta_ref[...]

        if dropout_p >= 1.0:
            y = jnp.zeros_like(y)
        elif dropout_p > 0.0:
            seed = lax.convert_element_type(seed_ref[0], jnp.uint32)
            y = _apply_dropout(y, seed, row_off, 0, dropout_p)
        o_ref[...] = y


# ----------------------------------------------------------------------------- wrapper


class PallasMLPBlock:
    """PyTorch MLPBlock forward (Linear -> activation -> [LayerNorm] -> [Dropout]).

    Weight / bias / LN params are padded and cast to the MXU dtype ONCE here, so per-call
    work is only the (conditional) x pad/cast plus the fused Pallas kernel.
    net2 (Linear -> Sigmoid) is the same block with activation='sigmoid', dropout=0.
    """

    def __init__(self, w, b=None, gamma=None, beta=None, *,
                 activation: str = "relu", layer_norm: bool = False,
                 dropout: float = 0.5, ln_eps: float = 1e-5,
                 matmul_dtype=jnp.bfloat16,
                 vmem_budget_bytes=None, vmem_limit_bytes=None):
        K, N = w.shape
        self.K, self.N = int(K), int(N)
        self.activation = activation
        self.layer_norm = bool(layer_norm)
        self.dropout = float(dropout) if dropout else 0.0
        self.ln_eps = float(ln_eps)
        self.matmul_dtype = matmul_dtype
        itemsize = jnp.dtype(matmul_dtype).itemsize

        budget, limit = _vmem_budget_and_limit(vmem_budget_bytes, vmem_limit_bytes)
        self.vmem_limit = limit

        if self.layer_norm:
            self.n_pad = _round_up(N, 128)
            self.TM_cap, self.TK = _select_tiles_full_n(K, self.n_pad, itemsize, budget)
            self.TN = None
        else:
            self.TM_cap, self.TN, self.TK = _select_tiles_tiled_n(K, N, itemsize, budget)
            self.n_pad = _round_up(N, self.TN)
        self.k_pad = _round_up(K, self.TK)

        if b is None:
            b = jnp.zeros((N,), jnp.float32)
        # Pad + cast once (cached for every forward call).
        self.w = _pad2(jnp.asarray(w, jnp.float32), self.k_pad, self.n_pad).astype(matmul_dtype)
        self.b = _pad_row(b, N, self.n_pad)
        if self.layer_norm:
            g = jnp.ones((N,), jnp.float32) if gamma is None else gamma
            bt = jnp.zeros((N,), jnp.float32) if beta is None else beta
            self.gamma = _pad_row(g, N, self.n_pad)
            self.beta = _pad_row(bt, N, self.n_pad)

    def __call__(self, x, seed=None, *, training: bool = True):
        M, K = x.shape
        assert K == self.K, "x feature dim must match weight in_features"
        p = self.dropout if training else 0.0
        if seed is None:
            seed = jnp.zeros((1,), jnp.int32)
        seed = jnp.reshape(jnp.asarray(seed, jnp.int32), (1,))

        TM = min(_round_up(M, 8), self.TM_cap)
        m_pad = _round_up(M, TM)
        xp = _pad2(x, m_pad, self.k_pad).astype(self.matmul_dtype)  # pad only if needed
        itemsize = jnp.dtype(self.matmul_dtype).itemsize

        if self.layer_norm:
            grid = (m_pad // TM, self.k_pad // self.TK)
            kernel = partial(_linear_act_ln_drop_kernel,
                             activation=self.activation, dropout_p=p,
                             ln_eps=self.ln_eps, true_n=self.N,
                             n_pad=self.n_pad, tm=TM)
            in_specs = [
                pl.BlockSpec((TM, self.TK), lambda i, k, s: (i, k)),        # x
                pl.BlockSpec((self.TK, self.n_pad), lambda i, k, s: (k, 0)),  # W
                pl.BlockSpec((1, self.n_pad), lambda i, k, s: (0, 0)),      # bias
                pl.BlockSpec((1, self.n_pad), lambda i, k, s: (0, 0)),      # gamma
                pl.BlockSpec((1, self.n_pad), lambda i, k, s: (0, 0)),      # beta
            ]
            out_specs = pl.BlockSpec((TM, self.n_pad), lambda i, k, s: (i, 0))
            dims = ("parallel", "arbitrary")
            operands = (seed, xp, self.w, self.b, self.gamma, self.beta)
            # W re-streamed once per M tile; x read once; output written once.
            bytes_accessed = ((m_pad // TM) * self.k_pad * self.n_pad * itemsize
                              + m_pad * self.k_pad * itemsize
                              + m_pad * self.n_pad * 4)
        else:
            grid = (m_pad // TM, self.n_pad // self.TN, self.k_pad // self.TK)
            kernel = partial(_linear_act_drop_kernel,
                             activation=self.activation, dropout_p=p,
                             tm=TM, tn=self.TN)
            in_specs = [
                pl.BlockSpec((TM, self.TK), lambda i, j, k, s: (i, k)),       # x
                pl.BlockSpec((self.TK, self.TN), lambda i, j, k, s: (k, j)),  # W
                pl.BlockSpec((1, self.TN), lambda i, j, k, s: (0, j)),        # bias
            ]
            out_specs = pl.BlockSpec((TM, self.TN), lambda i, j, k, s: (i, j))
            dims = ("parallel", "parallel", "arbitrary")
            operands = (seed, xp, self.w, self.b)
            # W re-streamed once per M tile; x re-streamed once per N tile.
            bytes_accessed = ((m_pad // TM) * self.k_pad * self.n_pad * itemsize
                              + (self.n_pad // self.TN) * m_pad * self.k_pad * itemsize
                              + m_pad * self.n_pad * 4)

        flops = 2 * m_pad * self.k_pad * self.n_pad
        transcendentals = ((m_pad * self.n_pad if self.activation == "sigmoid" else 0)
                           + (m_pad if self.layer_norm else 0))

        out = pl.pallas_call(
            kernel,
            out_shape=jax.ShapeDtypeStruct((m_pad, self.n_pad), jnp.float32),
            grid_spec=pltpu.PrefetchScalarGridSpec(
                num_scalar_prefetch=1,            # seed -> SMEM
                grid=grid,
                in_specs=in_specs,
                out_specs=out_specs),
            compiler_params=pltpu.CompilerParams(
                dimension_semantics=dims,
                vmem_limit_bytes=self.vmem_limit),
            cost_estimate=pl.CostEstimate(flops=flops,
                                          transcendentals=transcendentals,
                                          bytes_accessed=bytes_accessed),
        )(*operands)

        if m_pad == M and self.n_pad == self.N:
            return out                             # no trailing slice copy
        return out[:M, :self.N]


# ----------------------------------------------------------------------------- test


if __name__ == "__main__":
    # Small shapes consistent with DeepGraphGOModel: features (batch, nb_iprs),
    # net1: MLPBlock(nb_iprs, hidden_dim), net2: Linear(hidden_dim, nb_gos)+Sigmoid.
    batch, nb_iprs, hidden_dim, nb_gos = 16, 64, 128, 40

    key = jax.random.PRNGKey(0)
    kx, kw1, kb1, kw2, kb2 = jax.random.split(key, 5)

    features = jax.random.normal(kx, (batch, nb_iprs), jnp.float32)

    bound1 = 1.0 / math.sqrt(nb_iprs)
    w1 = jax.random.uniform(kw1, (nb_iprs, hidden_dim), jnp.float32, -bound1, bound1)
    b1 = jax.random.uniform(kb1, (hidden_dim,), jnp.float32, -bound1, bound1)

    bound2 = 1.0 / math.sqrt(hidden_dim)
    w2 = jax.random.uniform(kw2, (hidden_dim, nb_gos), jnp.float32, -bound2, bound2)
    b2 = jax.random.uniform(kb2, (nb_gos,), jnp.float32, -bound2, bound2)

    seed = jnp.array([1234], jnp.int32)

    # net1 = MLPBlock defaults: Linear -> ReLU -> Dropout(0.5). Params padded/cast once.
    net1 = PallasMLPBlock(w1, b1, activation="relu", layer_norm=False, dropout=0.5)
    # net2 = Linear(hidden_dim, nb_gos) -> Sigmoid (nb_gos=40 exercises N padding).
    net2 = PallasMLPBlock(w2, b2, activation="sigmoid", layer_norm=False, dropout=0.0)

    # Training-mode forward (dropout on).
    h_train = net1(features, seed, training=True)
    jax.block_until_ready(h_train)
    assert h_train.shape == (batch, hidden_dim)

    # Eval-mode (dropout off) for deterministic numerical checks.
    h_eval = net1(features, seed, training=False)
    ref_h = jnp.maximum(
        jnp.dot(features.astype(jnp.bfloat16), w1.astype(jnp.bfloat16),
                preferred_element_type=jnp.float32) + b1[None, :], 0.0)
    assert jnp.allclose(h_eval, ref_h, atol=1e-3, rtol=1e-2), "net1 (relu) mismatch"

    # Exercise the LayerNorm branch of MLPBlock (full-N path).
    net1_ln = PallasMLPBlock(w1, b1, activation="relu", layer_norm=True, dropout=0.5)
    h_ln = net1_ln(features, seed, training=False)
    mean = ref_h.mean(-1, keepdims=True)
    var = ((ref_h - mean) ** 2).mean(-1, keepdims=True)
    ref_ln = (ref_h - mean) * lax.rsqrt(var + 1e-5)
    assert jnp.allclose(h_ln, ref_ln, atol=5e-3, rtol=5e-2), "layer_norm mismatch"

    # net2: Linear -> Sigmoid.
    logits = net2(h_eval, training=False)
    ref_logits = jax.nn.sigmoid(
        jnp.dot(h_eval.astype(jnp.bfloat16), w2.astype(jnp.bfloat16),
                preferred_element_type=jnp.float32) + b2[None, :])
    assert jnp.allclose(logits, ref_logits, atol=2e-3), "net2 (sigmoid) mismatch"

    jax.block_until_ready(logits)
    print("KERNEL_OK")
</pallas_src>

<mosaic_0001>
module attributes {stable_mosaic.version = 11 : i64} {
  func.func @_linear_act_drop_kernel(%arg0: i32, %arg1: i32, %arg2: i32, %arg3: memref<1xi32, #tpu.memory_space<smem>>, %arg4: memref<16x128xbf16, #tpu.memory_space<vmem>>, %arg5: memref<128x128xbf16, #tpu.memory_space<vmem>>, %arg6: memref<1x128xf32, #tpu.memory_space<vmem>>, %arg7: memref<16x128xf32, #tpu.memory_space<vmem>>) attributes {dimension_semantics = [#tpu.dimension_semantics<parallel>, #tpu.dimension_semantics<parallel>, #tpu.dimension_semantics<arbitrary>], iteration_bounds = array<i64: 1, 1, 1>, scalar_prefetch = 1 : i64, scratch_operands = 0 : i64, tpu.core_type = #tpu.core_type<tc>, window_params = [{transform_indices = @transform_0, window_bounds = array<i64: 16, 128>}, {transform_indices = @transform_1, window_bounds = array<i64: 128, 128>}, {transform_indices = @transform_2, window_bounds = array<i64: 1, 128>}, {transform_indices = @transform_3, window_bounds = array<i64: 16, 128>}]} {
    %c16_i32 = arith.constant 16 : i32
    %0 = arith.muli %arg0, %c16_i32 : i32
    %c128_i32 = arith.constant 128 : i32
    %1 = arith.muli %arg1, %c128_i32 : i32
    %c0_i32 = arith.constant 0 : i32
    %2 = arith.cmpi eq, %arg2, %c0_i32 : i32
    %3 = arith.extui %2 : i1 to i32
    %c0_i32_0 = arith.constant 0 : i32
    %4 = arith.cmpi ne, %3, %c0_i32_0 : i32
    scf.if %4 {
      %cst_10 = arith.constant 0.000000e+00 : f32
      %14 = vector.broadcast %cst_10 : f32 to vector<16x128xf32>
      %c0_11 = arith.constant 0 : index
      %c0_12 = arith.constant 0 : index
      %15 = vector.load %arg7[%c0_11, %c0_12] : memref<16x128xf32, #tpu.memory_space<vmem>>, vector<16x128xf32>
      tpu.vector_store %arg7[%c0_11, %c0_12], %14 {strides = array<i32>} : memref<16x128xf32, #tpu.memory_space<vmem>>, vector<16x128xf32>,
    } else {
    }
    %c0 = arith.constant 0 : index
    %c0_1 = arith.constant 0 : index
    %5 = vector.load %arg7[%c0, %c0_1] : memref<16x128xf32, #tpu.memory_space<vmem>>, vector<16x128xf32>
    %c0_2 = arith.constant 0 : index
    %c0_3 = arith.constant 0 : index
    %6 = vector.load %arg4[%c0_2, %c0_3] : memref<16x128xbf16, #tpu.memory_space<vmem>>, vector<16x128xbf16>
    %c0_4 = arith.constant 0 : index
    %c0_5 = arith.constant 0 : index
    %7 = vector.load %arg5[%c0_4, %c0_5] : memref<128x128xbf16, #tpu.memory_space<vmem>>, vector<128x128xbf16>
    %cst = arith.constant dense<0.000000e+00> : vector<16x128xf32>
    %8 = tpu.matmul %6, %7, %cst {dimension_numbers = #tpu.dot_dimension_numbers<[1], [0], [0], [1], [0, 0, 1, 1], [], []>} : vector<16x128xbf16>, vector<128x128xbf16>, vector<16x128xf32> -> vector<16x128xf32>
    %9 = arith.addf %5, %8 : vector<16x128xf32>
    %c0_6 = arith.constant 0 : index
    %c0_7 = arith.constant 0 : index
    %10 = vector.load %arg7[%c0_6, %c0_7] : memref<16x128xf32, #tpu.memory_space<vmem>>, vector<16x128xf32>
    tpu.vector_store %arg7[%c0_6, %c0_7], %9 {strides = array<i32>} : memref<16x128xf32, #tpu.memory_space<vmem>>, vector<16x128xf32>,
    %c0_i32_8 = arith.constant 0 : i32
    %11 = arith.cmpi eq, %arg2, %c0_i32_8 : i32
    %12 = arith.extui %11 : i1 to i32
    %c0_i32_9 = arith.constant 0 : i32
    %13 = arith.cmpi ne, %12, %c0_i32_9 : i32
    scf.if %13 {
      %c0_10 = arith.constant 0 : index
      %c0_11 = arith.constant 0 : index
      %14 = vector.load %arg7[%c0_10, %c0_11] : memref<16x128xf32, #tpu.memory_space<vmem>>, vector<16x128xf32>
      %c0_12 = arith.constant 0 : index
      %c0_13 = arith.constant 0 : index
      %15 = vector.load %arg6[%c0_12, %c0_13] : memref<1x128xf32, #tpu.memory_space<vmem>>, vector<1x128xf32>
      %16 = vector.broadcast %15 : vector<1x128xf32> to vector<16x128xf32>
      %17 = arith.addf %14, %16 : vector<16x128xf32>
      %cst_14 = arith.constant 0.000000e+00 : f32
      %18 = vector.broadcast %cst_14 : f32 to vector<16x128xf32>
      %19 = arith.maximumf %17, %18 : vector<16x128xf32>
      %c0_15 = arith.constant 0 : index
      %20 = memref.load %arg3[%c0_15] : memref<1xi32, #tpu.memory_space<smem>>
      %21 = tpu.iota {dimensions = array<i32: 0>} : vector<16x128xi32>
      %22 = vector.broadcast %0 : i32 to vector<16x128xi32>
      %23 = arith.addi %21, %22 : vector<16x128xi32>
      %24 = tpu.iota {dimensions = array<i32: 1>} : vector<16x128xi32>
      %25 = vector.broadcast %1 : i32 to vector<16x128xi32>
      %26 = arith.addi %24, %25 : vector<16x128xi32>
      %c-1640531527_i32 = arith.constant -1640531527 : i32
      %27 = arith.muli %20, %c-1640531527_i32 : i32
      %28 = vector.broadcast %27 : i32 to vector<16x128xi32>
      %29 = arith.xori %23, %28 : vector<16x128xi32>
      %c-862048943_i32 = arith.constant -862048943 : i32
      %30 = vector.broadcast %c-862048943_i32 : i32 to vector<16x128xi32>
      %31 = arith.muli %29, %30 : vector<16x128xi32>
      %c16_i32_16 = arith.constant 16 : i32
      %32 = vector.broadcast %c16_i32_16 : i32 to vector<16x128xi32>
      %33 = arith.shrui %31, %32 : vector<16x128xi32>
      %34 = arith.xori %31, %33 : vector<16x128xi32>
      %c-2048144777_i32 = arith.constant -2048144777 : i32
      %35 = vector.broadcast %c-2048144777_i32 : i32 to vector<16x128xi32>
      %36 = arith.muli %26, %35 : vector<16x128xi32>
      %37 = arith.xori %34, %36 : vector<16x128xi32>
      %c668265263_i32 = arith.constant 668265263 : i32
      %38 = vector.broadcast %c668265263_i32 : i32 to vector<16x128xi32>
      %39 = arith.muli %37, %38 : vector<16x128xi32>
      %c15_i32 = arith.constant 15 : i32
      %40 = vector.broadcast %c15_i32 : i32 to vector<16x128xi32>
      %41 = arith.shrui %39, %40 : vector<16x128xi32>
      %42 = arith.xori %39, %41 : vector<16x128xi32>
      %c374761393_i32 = arith.constant 374761393 : i32
      %43 = vector.broadcast %c374761393_i32 : i32 to vector<16x128xi32>
      %44 = arith.muli %42, %43 : vector<16x128xi32>
      %c16_i32_17 = arith.constant 16 : i32
      %45 = vector.broadcast %c16_i32_17 : i32 to vector<16x128xi32>
      %46 = arith.shrui %44, %45 : vector<16x128xi32>
      %47 = arith.xori %44, %46 : vector<16x128xi32>
      %c-2147483648_i32 = arith.constant -2147483648 : i32
      %48 = vector.broadcast %c-2147483648_i32 : i32 to vector<16x128xi32>
      %49 = arith.cmpi uge, %47, %48 : vector<16x128xi32>
      %cst_18 = arith.constant 2.000000e+00 : f32
      %50 = vector.broadcast %cst_18 : f32 to vector<16x128xf32>
      %51 = arith.mulf %19, %50 : vector<16x128xf32>
      %cst_19 = arith.constant 0.000000e+00 : f32
      %52 = vector.broadcast %cst_19 : f32 to vector<16x128xf32>
      %53 = arith.select %49, %51, %52 : vector<16x128xi1>, vector<16x128xf32>
      %c0_20 = arith.constant 0 : index
      %c0_21 = arith.constant 0 : index
      %54 = vector.load %arg7[%c0_20, %c0_21] : memref<16x128xf32, #tpu.memory_space<vmem>>, vector<16x128xf32>
      tpu.vector_store %arg7[%c0_20, %c0_21], %53 {strides = array<i32>} : memref<16x128xf32, #tpu.memory_space<vmem>>, vector<16x128xf32>,
    } else {
    }
    return
  }
  func.func @transform_0(%arg0: i32, %arg1: i32, %arg2: i32, %arg3: memref<1xi32, #tpu.memory_space<smem>>) -> (i32, i32) {
    %c0_i32 = arith.constant 0 : i32
    return %arg0, %arg2 : i32, i32
  }
  func.func @transform_1(%arg0: i32, %arg1: i32, %arg2: i32, %arg3: memref<1xi32, #tpu.memory_space<smem>>) -> (i32, i32) {
    %c0_i32 = arith.constant 0 : i32
    return %arg2, %arg1 : i32, i32
  }
  func.func @transform_2(%arg0: i32, %arg1: i32, %arg2: i32, %arg3: memref<1xi32, #tpu.memory_space<smem>>) -> (i32, i32) {
    %c0_i32 = arith.constant 0 : i32
    %c0_i32_0 = arith.constant 0 : i32
    return %c0_i32, %arg1 : i32, i32
  }
  func.func @transform_3(%arg0: i32, %arg1: i32, %arg2: i32, %arg3: memref<1xi32, #tpu.memory_space<smem>>) -> (i32, i32) {
    %c0_i32 = arith.constant 0 : i32
    return %arg0, %arg1 : i32, i32
  }
}

</mosaic_0001>

<bundles_post_ra>
// kernel: tpu_custom_call.1
= control target key start
LH: loop header
LB: loop body
LE: loop exit
PB: predicated region body
PF: predicated region fallthrough
CT: control target
= control target key end

     0   :  { %10 = vsyncpa [#allocation5], 0  ;;  %s423_s0 = inlined_call_operand.<no memory space> [shape: s32[1], index: 0, kind: input, shape index: {}]   ;;  %s424_s1 = inlined_call_operand.hbm [shape: bf16[16,128], index: 1, kind: input, shape index: {}]   ;;  %s425_s2 = inlined_call_operand.hbm [shape: bf16[128,128], index: 2, kind: input, shape index: {}]   ;;  %s426_s3 = inlined_call_operand.vmem [shape: f32[1,128], index: 3, kind: input, shape index: {}]   ;;  %s427_s4 = inlined_call_operand.hbm [shape: f32[16,128], index: 4, kind: output, shape index: {}]  }
   0x1   :  { %11 = vsyncpa [#allocation8], 0 }
   0x2   :  { %12 = vsyncpa [#allocation6], 0  ;;  %s374_s15 = smov [#allocation4]  }
   0x3   :  { %s18_s16 = sshll.u32 %s374_s15, 4  ;;  %s19_s16 = int_to_ptr.vmem [resolvable:$true] %s18_s16 }
   0x4   :  { %s316_s17 = scalar_lea.vmem %s19_s16, 128  ;;  %p321_p1 = scmp.lt.s32.totalorder %s19_s16, %s19_s16 }
   0x5   :  { %p317_p0 = scmp.ne.s32.totalorder %s19_s16, %s316_s17  ;;  %p322_p2 = scmp.lt.s32.totalorder %s316_s17, %s316_s17 }
   0x7   :  { %p323_p3 = por %p322_p2, %p321_p1 }
   0x9   :  { %p324_p4 = pnand %p323_p3, %p317_p0 }
   0xb   :  { %327 = shalt.err (!%p324_p4)
}
   0xc   :  { %s375_s18 = smov 64   ;;  %s376_s19 = smov 4  }
   0xd   :  { %24 = dma.hbm_to_vmem [thread:$0]  %s424_s1, 128, %s19_s16, [#allocation5], %s375_s18, %s375_s18, %s376_s19  }
   0xe   :  { %s377_s22 = smov [#allocation7]  }
   0xf   :  { %s30_s23 = sshll.u32 %s377_s22, 4  ;;  %s31_s23 = int_to_ptr.vmem [resolvable:$true] %s30_s23 }
  0x10   :  { %s336_s24 = scalar_lea.vmem %s31_s23, 1024  ;;  %p341_p6 = scmp.lt.s32.totalorder %s31_s23, %s31_s23 }
  0x11   :  { %p337_p5 = scmp.ne.s32.totalorder %s31_s23, %s336_s24  ;;  %p342_p7 = scmp.lt.s32.totalorder %s336_s24, %s336_s24 }
  0x13   :  { %p343_p8 = por %p342_p7, %p341_p6 }
  0x15   :  { %p344_p9 = pnand %p343_p8, %p337_p5 }
  0x17   :  { %347 = shalt.err (!%p344_p9)
}
  0x18   :  { %36 = dma.hbm_to_vmem [thread:$0]  %s425_s2, 1024, %s31_s23, [#allocation8], %s375_s18, %s375_s18, %s376_s19  }
  0x19   :  { %368 = dma.done.wait [#allocation5], 128  }
  0x1a   :  { %369 = vsyncadd [#allocation5], 4294967168 }
  0x1b   :  { %370 = dma.done.wait [#allocation8], 1024  }
  0x1c   :  { %371 = vsyncadd [#allocation8], 4294966272  ;;  %v378_v0 = vmov 0.0   ;;  %vm379_vm0 = vmmov 0   ;;  %v299_v1 = vld [vmem:[#allocation7 + $0x38] sm:$0xff]   ;;  %v300_v2 = vld [vmem:[#allocation7 + $0x30] sm:$0xff]   ;;  %v190_v10 = vlaneseq }
  0x1d   :  { %270 = vmatprep.subr.bf16.mxu0 %v378_v0  ;;  %286 = vmatprep.mubr.msk.bf16.mxu0 %vm379_vm0, %v378_v0  ;;  %v301_v3 = vld [vmem:[#allocation7 + $0x28] sm:$0xff]   ;;  %v302_v4 = vld [vmem:[#allocation7 + $0x20] sm:$0xff]   ;;  %v303_v5 = vld [vmem:[#allocation7 + $0x18] sm:$0xff]   ;;  %s200_s27 = smul.u32 2654435769, %s423_s0  ;;  %s380_s29 = smov [#allocation9]  }
  0x1e   :  { %271 = vmatpush3.bf16.msra.mxu0 %v299_v1  ;;  %v304_v6 = vld [vmem:[#allocation7 + $0x10] sm:$0xff]   ;;  %v305_v7 = vld [vmem:[#allocation7 + $0x8] sm:$0xff]   ;;  %v306_v8 = vld [vmem:[#allocation7] sm:$0xff]   ;;  %v191_v11 = vshrl.u32 %v190_v10, 7  ;;  %v197_v17 = vand.u32 127, %v190_v10  ;;  %s238_s30 = sshll.u32 %s380_s29, 4  ;;  %s239_s30 = int_to_ptr.vmem [resolvable:$true] %s238_s30 }
  0x1f   :  { %272 = vmatprep.subr.bf16.mxu0 %v378_v0  ;;  %v307_v9 = vld [vmem:[#allocation4] sm:$0xff]   ;;  %v201_v12 = vstv %s200_s27  ;;  %p353_p11 = scmp.lt.s32.totalorder %s239_s30, %s239_s30 }
  0x20   :  { %v192_v13 = vadd.s32 8, %v191_v11  ;;  %v202_v14 = vxor.u32 %v201_v12, %v191_v11  ;;  %v210_v22 = vmul.u32 2246822519, %v197_v17  ;;  %v260_v36 = vld [vmem:[%s426_s3] ss:$0 sm:$0xff]  ;;  %s348_s3 = scalar_lea.vmem %s239_s30, 256 }
  0x21   :  { %p349_p10 = scmp.ne.s32.totalorder %s239_s30, %s348_s3  ;;  %p354_p12 = scmp.lt.s32.totalorder %s348_s3, %s348_s3 }
  0x22   :  { %273 = vmatpush3.bf16.msra.mxu0 %v300_v2  ;;  %v203_v15 = vxor.u32 %v201_v12, %v192_v13  ;;  %v204_v16 = vmul.u32 3432918353, %v202_v14 }
  0x23   :  { %274 = vmatprep.subr.bf16.mxu0 %v378_v0  ;;  %p355_p13 = por %p354_p12, %p353_p11 }
  0x24   :  { %v205_v18 = vmul.u32 3432918353, %v203_v15  ;;  %v206_v19 = vshrl.u32 %v204_v16, 16 }
  0x25   :  { %p356_p0 = pnand %p355_p13, %p349_p10 }
  0x26   :  { %275 = vmatpush3.bf16.msra.mxu0 %v301_v3  ;;  %v207_v20 = vshrl.u32 %v205_v18, 16  ;;  %v208_v21 = vxor.u32 %v206_v19, %v204_v16 }
  0x27   :  { %276 = vmatprep.subr.bf16.mxu0 %v378_v0 }
  0x28   :  { %v209_v23 = vxor.u32 %v207_v20, %v205_v18  ;;  %v211_v24 = vxor.u32 %v210_v22, %v208_v21 }
  0x2a   :  { %277 = vmatpush3.bf16.msra.mxu0 %v302_v4  ;;  %v212_v25 = vxor.u32 %v210_v22, %v209_v23  ;;  %v213_v26 = vmul.u32 668265263, %v211_v24 }
  0x2b   :  { %278 = vmatprep.subr.bf16.mxu0 %v378_v0 }
  0x2c   :  { %v214_v27 = vmul.u32 668265263, %v212_v25  ;;  %v215_v28 = vshrl.u32 %v213_v26, 15 }
  0x2e   :  { %279 = vmatpush3.bf16.msra.mxu0 %v303_v5  ;;  %v216_v29 = vshrl.u32 %v214_v27, 15  ;;  %v217_v30 = vxor.u32 %v215_v28, %v213_v26 }
  0x2f   :  { %280 = vmatprep.subr.bf16.mxu0 %v378_v0 }
  0x30   :  { %v218_v31 = vxor.u32 %v216_v29, %v214_v27  ;;  %v219_v32 = vmul.u32 374761393, %v217_v30 }
  0x32   :  { %281 = vmatpush3.bf16.msra.mxu0 %v304_v6  ;;  %v220_v33 = vmul.u32 374761393, %v218_v31  ;;  %v221_v34 = vshrl.u32 %v219_v32, 16 }
  0x33   :  { %282 = vmatprep.subr.bf16.mxu0 %v378_v0 }
  0x34   :  { %v222_v38 = vshrl.u32 %v220_v33, 16  ;;  %v223_v39 = vxor.u32 %v221_v34, %v219_v32 }
  0x36   :  { %283 = vmatpush3.bf16.msra.mxu0 %v305_v7  ;;  %v224_v44 = vxor.u32 %v222_v38, %v220_v33  ;;  %vm225_vm1 = vcmp.ge.u32.totalorder %v223_v39, 2147483648 }
  0x37   :  { %284 = vmatprep.subr.bf16.mxu0 %v378_v0 }
  0x38   :  { %vm226_vm2 = vcmp.ge.u32.totalorder %v224_v44, 2147483648 }
  0x3a   :  { %285 = vmatpush3.bf16.msra.mxu0 %v306_v8 }
  0x3d   :  { %287 = vmatmul.mubr.bf16.vlgmr.msra.gmra.mxu0 %v307_v9 }
  0xfd   :  { %v162_v35 = vpop.f32.mrf.mxu0 }
  0xfe   :  { %v185_v40 = vadd.f32 %v260_v36, %v162_v35 }
  0xff   :  { %v288_v37 = vpop.f32.mrf.mxu0 }
 0x100   :  { %v187_v42 = vmax.f32 %v185_v40, 0.0 }
 0x101   :  { %v165_v41 = vpop.f32.mrf.mxu0 }
 0x102   :  { %v186_v45 = vadd.f32 %v260_v36, %v165_v41  ;;  %v227_v46 = vmul.f32 2.0, %v187_v42 }
 0x103   :  { %v289_v43 = vpop.f32.mrf.mxu0 }
 0x104   :  { %v188_v47 = vmax.f32 %v186_v45, 0.0  ;;  %v229_v48 = vsel %vm225_vm1, %v227_v46, 0.0 }
 0x105   :  { %231 = vst [vmem:[#allocation9] sm:$0xff] %v229_v48 }
 0x106   :  { %v228_v49 = vmul.f32 2.0, %v188_v47 }
 0x108   :  { %v230_v50 = vsel %vm226_vm2, %v228_v49, 0.0 }
 0x109   :  { %232 = vst [vmem:[#allocation9 + $0x8] sm:$0xff] %v230_v50 }
 0x10a   :  { %359 = shalt.err (!%p356_p0)
}
 0x10b   :  { %s381_s5 = smov 128   ;;  %s382_s6 = smov 8  }
 0x10c   :  { %244 = dma.vmem_to_hbm [thread:$0]  %s239_s30, 256, %s427_s4, [#allocation6], %s381_s5, %s381_s5, %s382_s6  }
 0x10d   :  { %372 = dma.done.wait [#allocation6], 256  }
 0x10e   :  { %373 = vsyncadd [#allocation6], 4294967040 }
 0x10f   :  { %248 = vsyncpa [#allocation5], 1 }
 0x110   :  { %249 = vsyncpa [#allocation8], 1 }
 0x111   :  { %250 = vsyncpa [#allocation6], 1 }

</bundles_post_ra>
